<compile_context>
chip_gen: v5e
topology: v5e:2x2
jax: 0.10.0
libtpu: 0.0.40
codegen_flags: <defaults>
</compile_context>

<pallas_src>
import jax
import jax.numpy as jnp
from jax.experimental import pallas as pl
from jax.experimental.pallas import tpu as pltpu


def mlp_kernel(xT_ref, w1T_ref, b1c_ref, w2r_ref, b2_ref, o_ref):
    # Everything below is lane-dense: batch lives on the lane (last) axis.
    xT = xT_ref[...]                                     # (in, TB)
    # layer 1 on the MXU: (hidden, in) @ (in, TB) -> (hidden, TB), f32 accum
    hT = jnp.dot(w1T_ref[...], xT, preferred_element_type=jnp.float32)
    hT = jnp.maximum(hT + b1c_ref[...], 0.0)             # bias + relu (VPU)
    # layer 2 on the MXU with N = TB (not 1): (1, hidden) @ (hidden, TB) -> (1, TB)
    z = jnp.dot(w2r_ref[...], hT.astype(w2r_ref.dtype),
                preferred_element_type=jnp.float32)
    z = z + b2_ref[0, 0]                                 # SMEM scalar bias
    o_ref[...] = jax.nn.sigmoid(z).astype(o_ref.dtype)   # exp on EUP, lane-dense store


def _round_up(n, m):
    return ((n + m - 1) // m) * m


def neural_net_forward(x, w1, b1, w2, b2, *, block_b=4096, use_bf16_matmul=False):
    """x: (B, in), w1: (in, hidden), b1: (hidden,), w2: (hidden, 1), b2: (1, 1)."""
    B, in_dim = x.shape
    hidden = w1.shape[1]

    # Batch-in-lanes (transposed) layout -- layout plumbing only, no compute.
    xT = x.T                                             # (in, B), streamed
    w1T = w1.T                                           # (hidden, in), resident
    b1c = jnp.asarray(b1, jnp.float32).reshape(hidden, 1)   # per-sublane bias column
    w2r = jnp.asarray(w2).reshape(1, hidden)             # lane-dense weight row
    b2s = jnp.asarray(b2, jnp.float32).reshape(1, 1)     # SMEM scalar

    if use_bf16_matmul:
        # Cast once in the wrapper (x HBM bytes halved, weights cast once);
        # the kernel keeps f32 accumulation + f32 elementwise (v5e-safe).
        xT = xT.astype(jnp.bfloat16)
        w1T = w1T.astype(jnp.bfloat16)
        w2r = w2r.astype(jnp.bfloat16)

    # Batch tile: lane granularity (multiple of 128), large enough to amortize
    # per-grid-step overhead.  No jnp.pad: the last block may be partial and
    # Pallas masks the out-of-range output lanes (they never feed real rows,
    # since neither matmul contracts over the batch/lane axis).
    TB = min(_round_up(block_b, 128), _round_up(B, 128))
    n_blocks = pl.cdiv(B, TB)

    out = pl.pallas_call(
        mlp_kernel,
        out_shape=jax.ShapeDtypeStruct((1, B), jnp.float32),
        grid=(n_blocks,),
        in_specs=[
            pl.BlockSpec((in_dim, TB), lambda i: (0, i)),       # x^T: streamed, lane-dense
            pl.BlockSpec((hidden, in_dim), lambda i: (0, 0)),   # w1^T: resident
            pl.BlockSpec((hidden, 1), lambda i: (0, 0)),        # b1 column: resident
            pl.BlockSpec((1, hidden), lambda i: (0, 0)),        # w2 row: resident
            pl.BlockSpec(memory_space=pltpu.MemorySpace.SMEM),  # b2: SMEM scalar
        ],
        out_specs=pl.BlockSpec((1, TB), lambda i: (0, i)),      # lane-dense output
        compiler_params=pltpu.CompilerParams(
            dimension_semantics=("parallel",),                  # v7x: shard batch over 2 TCs
        ),
    )(xT, w1T, b1c, w2r, b2s)
    return out.reshape(B, 1)


def _ref_forward(x, w1, b1, w2, b2):
    return jax.nn.sigmoid(
        jnp.maximum(x @ w1 + b1.reshape(1, -1), 0.0) @ w2.reshape(-1, 1)
        + jnp.asarray(b2).reshape(1, 1)
    )


if __name__ == "__main__":
    # module shapes: input_size=16, hidden_size=32, output=1; batch=8
    batch, input_size, hidden_size = 8, 16, 32

    key = jax.random.PRNGKey(0)
    kx, kw1, kb1, kw2, kb2 = jax.random.split(key, 5)

    x = jax.random.normal(kx, (batch, input_size), dtype=jnp.float32)

    # Deterministic init mimicking PyTorch nn.Linear default (uniform +-1/sqrt(fan_in)).
    lim1 = 1.0 / jnp.sqrt(jnp.float32(input_size))
    lim2 = 1.0 / jnp.sqrt(jnp.float32(hidden_size))
    w1 = jax.random.uniform(kw1, (input_size, hidden_size), jnp.float32, -lim1, lim1)
    b1 = jax.random.uniform(kb1, (hidden_size,), jnp.float32, -lim1, lim1)
    w2 = jax.random.uniform(kw2, (hidden_size, 1), jnp.float32, -lim2, lim2)
    b2 = jax.random.uniform(kb2, (1, 1), jnp.float32, -lim2, lim2)

    out = jax.block_until_ready(neural_net_forward(x, w1, b1, w2, b2))
    ref = _ref_forward(x, w1, b1, w2, b2)
    assert out.shape == (batch, 1)
    assert jnp.allclose(out, ref, atol=1e-5, rtol=1e-5)

    # Larger, non-multiple batch: exercises the multi-step "parallel" batch
    # grid plus a partial last block (no wrapper padding copy).
    big_b = 300
    xb = jax.random.normal(jax.random.PRNGKey(1), (big_b, input_size), jnp.float32)
    out_b = jax.block_until_ready(neural_net_forward(xb, w1, b1, w2, b2, block_b=128))
    ref_b = _ref_forward(xb, w1, b1, w2, b2)
    assert out_b.shape == (big_b, 1)
    assert jnp.allclose(out_b, ref_b, atol=1e-5, rtol=1e-5)

    print("KERNEL_OK")
</pallas_src>

<mosaic_0001>
module attributes {stable_mosaic.version = 11 : i64} {
  func.func @mlp_kernel(%arg0: i32, %arg1: memref<16x128xf32, #tpu.memory_space<vmem>>, %arg2: memref<32x16xf32, #tpu.memory_space<vmem>>, %arg3: memref<32x1xf32, #tpu.memory_space<vmem>>, %arg4: memref<1x32xf32, #tpu.memory_space<vmem>>, %arg5: memref<1x1xf32, #tpu.memory_space<smem>>, %arg6: memref<1x128xf32, #tpu.memory_space<vmem>>) attributes {dimension_semantics = [#tpu.dimension_semantics<parallel>], iteration_bounds = array<i64: 1>, scalar_prefetch = 0 : i64, scratch_operands = 0 : i64, tpu.core_type = #tpu.core_type<tc>, window_params = [{transform_indices = @transform_0, window_bounds = array<i64: 16, 128>}, {pipeline_mode = #tpu.pipeline_mode<synchronous>, transform_indices = @transform_1, window_bounds = array<i64: 32, 16>}, {pipeline_mode = #tpu.pipeline_mode<synchronous>, transform_indices = @transform_2, window_bounds = array<i64: 32, 1>}, {pipeline_mode = #tpu.pipeline_mode<synchronous>, transform_indices = @transform_3, window_bounds = array<i64: 1, 32>}, {transform_indices = @transform_4, window_bounds = array<i64: 1, 1>}, {transform_indices = @transform_5, window_bounds = array<i64: 1, 128>}]} {
    %c0 = arith.constant 0 : index
    %c0_0 = arith.constant 0 : index
    %0 = vector.load %arg1[%c0, %c0_0] : memref<16x128xf32, #tpu.memory_space<vmem>>, vector<16x128xf32>
    %c0_1 = arith.constant 0 : index
    %c0_2 = arith.constant 0 : index
    %1 = vector.load %arg2[%c0_1, %c0_2] : memref<32x16xf32, #tpu.memory_space<vmem>>, vector<32x16xf32>
    %cst = arith.constant dense<0.000000e+00> : vector<32x128xf32>
    %2 = tpu.matmul %1, %0, %cst {dimension_numbers = #tpu.dot_dimension_numbers<[1], [0], [0], [1], [0, 0, 1, 1], [], []>} : vector<32x16xf32>, vector<16x128xf32>, vector<32x128xf32> -> vector<32x128xf32>
    %c0_3 = arith.constant 0 : index
    %c0_4 = arith.constant 0 : index
    %3 = vector.load %arg3[%c0_3, %c0_4] : memref<32x1xf32, #tpu.memory_space<vmem>>, vector<32x1xf32>
    %4 = vector.broadcast %3 : vector<32x1xf32> to vector<32x128xf32>
    %5 = arith.addf %2, %4 : vector<32x128xf32>
    %cst_5 = arith.constant 0.000000e+00 : f32
    %6 = vector.broadcast %cst_5 : f32 to vector<32x128xf32>
    %7 = arith.maximumf %5, %6 : vector<32x128xf32>
    %c0_6 = arith.constant 0 : index
    %c0_7 = arith.constant 0 : index
    %8 = vector.load %arg4[%c0_6, %c0_7] : memref<1x32xf32, #tpu.memory_space<vmem>>, vector<1x32xf32>
    %cst_8 = arith.constant dense<0.000000e+00> : vector<1x128xf32>
    %9 = tpu.matmul %8, %7, %cst_8 {dimension_numbers = #tpu.dot_dimension_numbers<[1], [0], [0], [1], [0, 0, 1, 1], [], []>} : vector<1x32xf32>, vector<32x128xf32>, vector<1x128xf32> -> vector<1x128xf32>
    %c0_9 = arith.constant 0 : index
    %c0_10 = arith.constant 0 : index
    %10 = memref.load %arg5[%c0_9, %c0_10] : memref<1x1xf32, #tpu.memory_space<smem>>
    %11 = vector.broadcast %10 : f32 to vector<1x128xf32>
    %12 = arith.addf %9, %11 : vector<1x128xf32>
    %13 = arith.negf %12 : vector<1x128xf32>
    %14 = math.exp %13 : vector<1x128xf32>
    %cst_11 = arith.constant 1.000000e+00 : f32
    %15 = vector.broadcast %cst_11 : f32 to vector<1x128xf32>
    %16 = arith.addf %15, %14 : vector<1x128xf32>
    %17 = arith.divf %15, %16 : vector<1x128xf32>
    %c0_12 = arith.constant 0 : index
    %c0_13 = arith.constant 0 : index
    %18 = vector.load %arg6[%c0_12, %c0_13] : memref<1x128xf32, #tpu.memory_space<vmem>>, vector<1x128xf32>
    tpu.vector_store %arg6[%c0_12, %c0_13], %17 {strides = array<i32>} : memref<1x128xf32, #tpu.memory_space<vmem>>, vector<1x128xf32>,
    return
  }
  func.func @transform_0(%arg0: i32) -> (i32, i32) {
    %c0_i32 = arith.constant 0 : i32
    %c0_i32_0 = arith.constant 0 : i32
    return %c0_i32, %arg0 : i32, i32
  }
  func.func @transform_1(%arg0: i32) -> (i32, i32) {
    %c0_i32 = arith.constant 0 : i32
    %c0_i32_0 = arith.constant 0 : i32
    %c0_i32_1 = arith.constant 0 : i32
    return %c0_i32, %c0_i32_0 : i32, i32
  }
  func.func @transform_2(%arg0: i32) -> (i32, i32) {
    %c0_i32 = arith.constant 0 : i32
    %c0_i32_0 = arith.constant 0 : i32
    %c0_i32_1 = arith.constant 0 : i32
    return %c0_i32, %c0_i32_0 : i32, i32
  }
  func.func @transform_3(%arg0: i32) -> (i32, i32) {
    %c0_i32 = arith.constant 0 : i32
    %c0_i32_0 = arith.constant 0 : i32
    %c0_i32_1 = arith.constant 0 : i32
    return %c0_i32, %c0_i32_0 : i32, i32
  }
  func.func @transform_4(%arg0: i32) -> (i32, i32) {
    %c0_i32 = arith.constant 0 : i32
    %c0_i32_0 = arith.constant 0 : i32
    %c0_i32_1 = arith.constant 0 : i32
    return %c0_i32, %c0_i32_0 : i32, i32
  }
  func.func @transform_5(%arg0: i32) -> (i32, i32) {
    %c0_i32 = arith.constant 0 : i32
    %c0_i32_0 = arith.constant 0 : i32
    return %c0_i32, %arg0 : i32, i32
  }
}

</mosaic_0001>

<bundles_post_ra>
// kernel: tpu_custom_call.1
= control target key start
LH: loop header
LB: loop body
LE: loop exit
PB: predicated region body
PF: predicated region fallthrough
CT: control target
= control target key end

     0   :  { %vm52_vm0 = vcmask 130048   ;;  %v205_v4 = vmov 0   ;;  %s280_s0 = inlined_call_operand.vmem [shape: f32[16,8], index: 0, kind: input, shape index: {}]   ;;  %s281_s1 = inlined_call_operand.vmem [shape: f32[32,16], index: 1, kind: input, shape index: {}]   ;;  %s282_s2 = inlined_call_operand.vmem [shape: f32[32,1], index: 2, kind: input, shape index: {}]   ;;  %s283_s3 = inlined_call_operand.vmem [shape: f32[1,32], index: 3, kind: input, shape index: {}]   ;;  %s284_s4 = inlined_call_operand.<no memory space> [shape: f32[1,1], index: 4, kind: input, shape index: {}]   ;;  %s285_s5 = inlined_call_operand.hbm [shape: f32[1,8], index: 5, kind: output, shape index: {}]  }
   0x1   :  { %v23_v0 = vld [vmem:[%s280_s0 + $0x8] sm:$0xff]  ;;  %v22_v1 = vld [vmem:[%s280_s0] sm:$0xff]  ;;  %v27_v3 = vld [vmem:[%s281_s1 + $0x18] sm:$0xff]  ;;  %173 = vset.pattern.permute.xlu0 %v205_v4 }
   0x2   :  { %167 = vmatpush.msra.mxu2 %v23_v0  ;;  %168 = vmatpush.msra.mxu3 %v23_v0  ;;  %v25_v2 = vld [vmem:[%s281_s1 + $0x8] sm:$0xff]  ;;  %v31_v5 = vld [vmem:[%s282_s2 + $0x18] sm:$0xff]  ;;  %v24_v6 = vld [vmem:[%s281_s1] sm:$0xff] }
   0x3   :  { %79 = vmatpush.msra.mxu0 %v23_v0 }
   0x4   :  { %169 = vmatpush.msra.mxu2 %v22_v1  ;;  %170 = vmatpush.msra.mxu3 %v22_v1 }
   0x5   :  { %11 = vsyncpa [#allocation4], 0  ;;  %162 = vmatmul.msk.f32.vlgmr.msra.gmra.mxu2 %vm52_vm0, %v25_v2  ;;  %164 = vmatmul.msk.f32.vlgmr.msra.gmra.mxu3 %vm52_vm0, %v27_v3  ;;  %v29_v7 = vld [vmem:[%s282_s2 + $0x8] sm:$0xff]  ;;  %v26_v8 = vld [vmem:[%s281_s1 + $0x10] sm:$0xff]  ;;  %vm101_vm1 = vcmask 261120   ;;  %v100_v28 = vstv %s284_s4  ;;  %s152_s4 = sshll.u32 %s285_s5, 4  ;;  %s153_s4 = int_to_ptr.hbm [resolvable:$true] %s152_s4 }
   0x6   :  { %49 = vperm.xlu0 %173, %v31_v5   ;;  %80 = vmatpush.msra.mxu0 %v22_v1  ;;  %v30_v9 = vld [vmem:[%s282_s2 + $0x10] sm:$0xff]  ;;  %v28_v10 = vld [vmem:[%s282_s2] sm:$0xff] }
   0x7   :  { %161 = vmatmul.msk.f32.vlgmr.msra.gmra.mxu0 %vm52_vm0, %v24_v6  ;;  %174 = vset.pattern.permute.xlu1 %v205_v4  ;;  %v98_v27 = vld [vmem:[%s283_s3] sm:$0x1]  ;;  %s206_s3 = smov [#allocation3]  }
   0x8   :  { %39 = vperm.xlu1 %174, %v29_v7   ;;  %s150_s14 = sshll.u32 %s206_s3, 4  ;;  %s151_s14 = int_to_ptr.vmem [resolvable:$true] %s150_s14 }
   0xd   :  { %163 = vmatmul.msk.f32.gmra.mxu2 %vm52_vm0, %v26_v8 }
   0xe   :  { %44 = vperm.xlu0 %173, %v30_v9  }
  0x10   :  { %34 = vperm.xlu1 %174, %v28_v10  }
  0x78   :  { %v50_v11 = vpop.permute.xlu0 %49 }
  0x7a   :  { %v40_v12 = vpop.permute.xlu1 %39 }
  0x80   :  { %v45_v17 = vpop.permute.xlu0 %44 }
  0x82   :  { %v35_v18 = vpop.permute.xlu1 %34 }
  0x84   :  { %v82_v19 = vpop.f32.mrf.mxu0 }
  0x85   :  { %v83_v23 = vadd.f32 %v82_v19, %v35_v18 }
  0x87   :  { %v94_v26 = vmax.f32 %v83_v23, 0.0 }
  0x88   :  { %v85_v13 = vpop.f32.mrf.mxu2  ;;  %v91_v14 = vpop.f32.mrf.mxu3 }
  0x89   :  { %v92_v15 = vadd.f32 %v91_v14, %v50_v11  ;;  %v86_v21 = vadd.f32 %v85_v13, %v40_v12 }
  0x8b   :  { %v97_v16 = vmax.f32 %v92_v15, 0.0  ;;  %v95_v25 = vmax.f32 %v86_v21, 0.0 }
  0x8d   :  { %117 = vmatpush.msra.mxu1 %v97_v16 }
  0x90   :  { %v88_v20 = vpop.f32.mrf.mxu2 }
  0x91   :  { %v89_v22 = vadd.f32 %v88_v20, %v45_v17 }
  0x93   :  { %v96_v24 = vmax.f32 %v89_v22, 0.0 }
  0x95   :  { %118 = vmatpush.msra.mxu1 %v96_v24 }
  0x97   :  { %119 = vmatpush.msra.mxu1 %v95_v25 }
  0x99   :  { %120 = vmatpush.msra.mxu1 %v94_v26 }
  0x9a   :  { %165 = vmatmul.msk.f32.vlgmr.msra.gmra.mxu1 %vm101_vm1, %v98_v27 }
 0x117   :  { %v122_v29 = vpop.f32.mrf.mxu1 }
 0x118   :  { %v123_v30 = vadd.f32 %v122_v29, %v100_v28 }
 0x11a   :  { %v166_v31 = vmul.f32 -1.442695, %v123_v30 }
 0x11c   :  { %175 = vpow2.f32 %v166_v31 }
 0x122   :  { %v176_v32 = vpop.eup %175 }
 0x123   :  { %v128_v33 = vadd.f32 1.0, %v176_v32 }
 0x125   :  { %177 = vrcp.f32 %v128_v33  ;;  %v140_v37 = vand.u32 2147483648, %v128_v33  ;;  %v138_v39 = vand.u32 2147483647, %v128_v33  ;;  %vm134_vm3 = vweird.f32 %v128_v33 }
 0x127   :  { %v141_v41 = vor.u32 1.1754944e-38, %v140_v37  ;;  %vm139_vm5 = vcmp.eq.f32.partialorder %v138_v39, 8.507059e+37 }
 0x12b   :  { %v178_v34 = vpop.eup %177 }
 0x12c   :  { %v130_v35 = vmul.f32 %v178_v34, %v128_v33  ;;  %vm135_vm2 = vweird.f32 %v178_v34 }
 0x12d   :  { %vm136_vm4 = vmor %vm134_vm3, %vm135_vm2 }
 0x12e   :  { %v131_v36 = vsub.f32 1.0, %v130_v35 }
 0x130   :  { %v132_v38 = vmul.f32 %v178_v34, %v131_v36 }
 0x132   :  { %v133_v40 = vadd.f32 %v178_v34, %v132_v38 }
 0x134   :  { %v137_v42 = vsel %vm136_vm4, %v178_v34, %v133_v40 }
 0x135   :  { %v142_v43 = vsel %vm139_vm5, %v141_v41, %v137_v42 }
 0x136   :  { %144 = vst [vmem:[#allocation3] sm:$0x1] %v142_v43 }
 0x137   :  { %155 = dma.vmem_to_hbm [thread:$0]  %s151_s14, 16, %s153_s4, [#allocation4]  }
 0x138   :  { %203 = dma.done.wait [#allocation4], 16  }
 0x139   :  { %204 = vsyncadd [#allocation4], 4294967280 }
 0x13a   :  { %160 = vsyncpa [#allocation4], 1 }

</bundles_post_ra>
